<compile_context>
chip_gen: v6e
topology: v6e:2x2x1
jax: 0.10.0
libtpu: 0.0.40
codegen_flags: <defaults>
</compile_context>

<pallas_src>
import functools
import math

import jax
import jax.numpy as jnp
import numpy as np
from jax import lax
from jax.experimental import pallas as pl
from jax.experimental.pallas import tpu as pltpu

_MASK_VALUE = -0.7 * float(np.finfo(np.float32).max)   # finite "-inf" for masked keys


def _round_up(x, m):
    return ((x + m - 1) // m) * m


def _largest_tile(dim, limit, multiple):
    """Largest divisor of `dim` that is a multiple of `multiple` and <= limit."""
    best = None
    for cand in range(multiple, dim + 1, multiple):
        if dim % cand == 0 and cand <= limit:
            best = cand
    return best if best is not None else dim


def _vmem_budget():
    """(physical VMEM, vmem_limit_bytes) — generation aware (v7x 64 MiB vs 128 MiB)."""
    try:
        cap = int(pltpu.get_tpu_info().vmem_capacity_bytes)
    except Exception:
        cap = 64 * 1024 * 1024          # conservative fallback (v7x physical VMEM)
    limit = max(32 * 1024 * 1024, (cap * 3) // 4)
    return cap, limit


# ---------------------------------------------------------------------------
# Tiled linear:  out[b, mi, ni] = x_tile @ W[:, ni] + b[ni]
# grid = (B, N/n_tile, M/m_tile): weight block is fetched once per n-tile and
# stays resident across the (innermost) row tiles; N-tiling bounds resident
# weight VMEM on v7x while 128 MiB parts get the full-width weight.
# ---------------------------------------------------------------------------
def _linear_kernel(x_ref, w_ref, b_ref, o_ref):
    # x: (m_tile, K) bf16   w: (K, n_tile) bf16   b: (1, n_tile) f32
    acc = jnp.dot(x_ref[0], w_ref[...], preferred_element_type=jnp.float32)
    o_ref[0] = (acc + b_ref[...]).astype(o_ref.dtype)


def _linear(x, w, b, out_dtype, m_tile, n_tile, vmem_limit):
    B, T, K = x.shape
    N = w.shape[1]
    return pl.pallas_call(
        _linear_kernel,
        out_shape=jax.ShapeDtypeStruct((B, T, N), out_dtype),
        grid_spec=pltpu.PrefetchScalarGridSpec(
            num_scalar_prefetch=0,
            grid=(B, N // n_tile, T // m_tile),
            in_specs=[
                pl.BlockSpec((1, m_tile, K), lambda bi, ni, mi: (bi, mi, 0)),
                pl.BlockSpec((K, n_tile), lambda bi, ni, mi: (0, ni)),
                pl.BlockSpec((1, n_tile), lambda bi, ni, mi: (0, ni)),
            ],
            out_specs=pl.BlockSpec((1, m_tile, n_tile),
                                   lambda bi, ni, mi: (bi, mi, ni)),
        ),
        compiler_params=pltpu.CompilerParams(
            dimension_semantics=("parallel", "parallel", "parallel"),
            vmem_limit_bytes=vmem_limit),
    )(x, w, b)


# ---------------------------------------------------------------------------
# Flash-attention core.
# grid = (B, head_groups, Tp/Tq, Tp/Tk); online softmax scratch persists over
# the (innermost, "arbitrary") k-tile axis.  q/k/v are read straight from the
# packed (B, Tp, 3E) QKV tensor; the output lands in (B, Tp, H*Dh) order.
# q was pre-scaled by 1/sqrt(Dh) in the wrapper (folded into W_q / b_q).
# ---------------------------------------------------------------------------
def _flash_attn_kernel(q_ref, k_ref, v_ref, o_ref, m_sc, l_sc, acc_sc, *,
                       head_dim, heads_per_group, seq_len, seq_pad, k_tile):
    ki = pl.program_id(3)

    @pl.when(ki == 0)
    def _():
        m_sc[...] = jnp.full(m_sc.shape, _MASK_VALUE, dtype=m_sc.dtype)
        l_sc[...] = jnp.zeros(l_sc.shape, dtype=l_sc.dtype)
        acc_sc[...] = jnp.zeros(acc_sc.shape, dtype=acc_sc.dtype)

    q = q_ref[0]                      # (Tq, g*Dh) bf16, g heads side by side
    k = k_ref[0]                      # (Tk, g*Dh)
    v = v_ref[0]                      # (Tk, g*Dh)

    mask = None
    if seq_len < seq_pad:             # static: padded keys must not contribute
        col = lax.broadcasted_iota(jnp.int32, (q.shape[0], k.shape[0]), 1)
        mask = (col + ki * k_tile) < seq_len

    for j in range(heads_per_group):  # static unroll over the packed heads
        sl = slice(j * head_dim, (j + 1) * head_dim)
        # scores (Tq, Tk), f32 accumulation on the MXU
        s = lax.dot_general(q[:, sl], k[:, sl], (((1,), (1,)), ((), ())),
                            preferred_element_type=jnp.float32)
        if mask is not None:
            s = jnp.where(mask, s, _MASK_VALUE)

        m_prev = m_sc[:, j:j + 1]
        m_new = jnp.maximum(m_prev, jnp.max(s, axis=-1, keepdims=True))
        alpha = jnp.exp(m_prev - m_new)
        p = jnp.exp(s - m_new)        # keep f32 (v5e EUP has no bf16 path)

        l_sc[:, j:j + 1] = alpha * l_sc[:, j:j + 1] + jnp.sum(p, axis=-1,
                                                              keepdims=True)
        acc_sc[:, sl] = alpha * acc_sc[:, sl] + jnp.dot(
            p.astype(v.dtype), v[:, sl], preferred_element_type=jnp.float32)
        m_sc[:, j:j + 1] = m_new

    @pl.when(ki == pl.num_programs(3) - 1)
    def _():
        inv = pl.reciprocal(l_sc[...], approx=True)       # deferred norm (EUP)
        outs = [acc_sc[:, j * head_dim:(j + 1) * head_dim] * inv[:, j:j + 1]
                for j in range(heads_per_group)]
        out = outs[0] if heads_per_group == 1 else jnp.concatenate(outs, -1)
        o_ref[0] = out.astype(o_ref.dtype)                # 128-lane dense store


def _flash_attention(qkv, *, batch, seq_pad, seq_len, embed, head_dim,
                     heads_per_group, num_heads, q_tile, k_tile, out_dtype,
                     vmem_limit):
    lanes = heads_per_group * head_dim
    n_groups = num_heads // heads_per_group
    k_base = embed // lanes           # block offset of the K segment in qkv
    v_base = 2 * embed // lanes       # block offset of the V segment in qkv

    def kv_spec(base):
        idx = lambda b, g, qi, ki, base=base: (b, ki, base + g)
        try:   # deeper k/v pipelining (blocks are small); degrade gracefully
            return pl.BlockSpec((1, k_tile, lanes), idx,
                                pipeline_mode=pl.Buffered(3))
        except Exception:
            return pl.BlockSpec((1, k_tile, lanes), idx)

    kernel = functools.partial(
        _flash_attn_kernel, head_dim=head_dim,
        heads_per_group=heads_per_group, seq_len=seq_len, seq_pad=seq_pad,
        k_tile=k_tile)

    return pl.pallas_call(
        kernel,
        out_shape=jax.ShapeDtypeStruct((batch, seq_pad, embed), out_dtype),
        grid_spec=pltpu.PrefetchScalarGridSpec(
            num_scalar_prefetch=0,
            grid=(batch, n_groups, seq_pad // q_tile, seq_pad // k_tile),
            in_specs=[
                pl.BlockSpec((1, q_tile, lanes),
                             lambda b, g, qi, ki: (b, qi, g)),
                kv_spec(k_base),
                kv_spec(v_base),
            ],
            out_specs=pl.BlockSpec((1, q_tile, lanes),
                                   lambda b, g, qi, ki: (b, qi, g)),
            scratch_shapes=[
                pltpu.VMEM((q_tile, heads_per_group), jnp.float32),   # m
                pltpu.VMEM((q_tile, heads_per_group), jnp.float32),   # l
                pltpu.VMEM((q_tile, lanes), jnp.float32),             # acc
            ],
        ),
        compiler_params=pltpu.CompilerParams(
            dimension_semantics=("parallel", "parallel", "parallel",
                                 "arbitrary"),
            vmem_limit_bytes=vmem_limit),
    )(qkv, qkv, qkv)


# ---------------------------------------------------------------------------
# Wrapper mirroring WhisperSdpaAttention.forward (default self-attention path)
# ---------------------------------------------------------------------------
def whisper_sdpa_attention(hidden_states, params, *, num_heads,
                           q_tile=None, k_tile=None):
    """hidden_states: (B, T, E).  params: PyTorch-layout projection weights.
    Returns attn_output (B, T, E)."""
    B, T, E = hidden_states.shape
    Dh = E // num_heads
    if Dh * num_heads != E:
        raise ValueError("embed_dim must be divisible by num_heads")
    scale = Dh ** -0.5

    # --- head packing: fill 128 lanes per flash block (Whisper Dh=64 -> 2 heads)
    g = min(num_heads, max(1, 128 // Dh))
    while num_heads % g != 0:
        g -= 1
    # TODO(synk): head_dims whose packed width isn't a multiple of 128 leave lanes underfilled.

    # --- flash tiles + sequence padding (T=1500 -> Tp=1536 with 256/512 tiles)
    if q_tile is None or k_tile is None:
        if T >= 1024:
            dq, dk = 256, 512
        elif T >= 256:
            dq, dk = 256, 256
        elif T >= 128:
            dq, dk = 128, 128
        else:
            dq = dk = _round_up(T, 8)
        q_tile = q_tile if q_tile is not None else dq
        k_tile = k_tile if k_tile is not None else dk
    assert q_tile % 8 == 0 and k_tile % 8 == 0
    seq_pad = _round_up(T, (q_tile * k_tile) // math.gcd(q_tile, k_tile))

    vmem_cap, vmem_limit = _vmem_budget()

    # --- linear tiles: big row tiles on 128 MiB parts, bounded weight on v7x
    m_limit = 1024 if vmem_cap >= (100 << 20) else 512
    m_tile = _largest_tile(seq_pad, m_limit, 8)
    weight_budget = vmem_limit // 3    # double-buffered bf16 weight block budget

    def pick_n(N, K):
        if N % 128 != 0:
            return N
        limit = max(128, weight_budget // (2 * K * 2))
        return _largest_tile(N, min(N, limit), 128)

    f32, bf16 = jnp.float32, jnp.bfloat16
    # PyTorch Linear weights are (out, in); transpose to (in, out).
    # Fold the SDPA 1/sqrt(head_dim) scale into W_q / b_q, fuse q/k/v weights
    # into one (E, 3E) matrix, cast to bf16 for the MXU.
    wq = params['q_w'].astype(f32).T * scale
    wk = params['k_w'].astype(f32).T
    wv = params['v_w'].astype(f32).T
    w_qkv = jnp.concatenate([wq, wk, wv], axis=1).astype(bf16)        # (E, 3E)
    b_qkv = jnp.concatenate([
        params['q_b'].astype(f32) * scale,
        jnp.zeros((E,), f32),                                         # k: no bias
        params['v_b'].astype(f32),
    ]).reshape(1, 3 * E)
    wo = params['o_w'].astype(f32).T.astype(bf16)                     # (E, E)
    bo = params['o_b'].astype(f32).reshape(1, E)

    # cast activations to bf16 once; pad T so every grid divides cleanly
    x = hidden_states.astype(bf16)
    if seq_pad != T:
        x = jnp.pad(x, ((0, 0), (0, seq_pad - T), (0, 0)))

    # --- fused QKV projection (bf16 operands, f32 accumulation)
    qkv = _linear(x, w_qkv, b_qkv, bf16, m_tile, pick_n(3 * E, E), vmem_limit)

    # --- flash attention straight off the packed QKV layout (no XLA transposes)
    ctx = _flash_attention(qkv, batch=B, seq_pad=seq_pad, seq_len=T, embed=E,
                           head_dim=Dh, heads_per_group=g, num_heads=num_heads,
                           q_tile=q_tile, k_tile=k_tile, out_dtype=bf16,
                           vmem_limit=vmem_limit)                     # (B,Tp,E)

    # --- output projection (consumes the concat-head layout directly)
    out = _linear(ctx, wo, bo, hidden_states.dtype, m_tile, pick_n(E, E),
                  vmem_limit)
    if seq_pad != T:
        out = out[:, :T, :]
    return out


# ---------------------------------------------------------------------------
# Pure-JAX reference mirroring the PyTorch forward (f32 throughout)
# ---------------------------------------------------------------------------
def _reference(hidden_states, params, *, num_heads):
    B, T, E = hidden_states.shape
    Dh = E // num_heads
    q = hidden_states @ params['q_w'].T + params['q_b']
    k = hidden_states @ params['k_w'].T
    v = hidden_states @ params['v_w'].T + params['v_b']

    def shape(x):
        return x.reshape(B, T, num_heads, Dh).transpose(0, 2, 1, 3)

    q, k, v = shape(q), shape(k), shape(v)
    scores = jnp.einsum('bhtd,bhsd->bhts', q, k) / math.sqrt(Dh)
    p = jax.nn.softmax(scores, axis=-1)
    ctx = jnp.einsum('bhts,bhsd->bhtd', p, v)
    ctx = ctx.transpose(0, 2, 1, 3).reshape(B, T, E)
    return ctx @ params['o_w'].T + params['o_b']


if __name__ == "__main__":
    # Whisper-like head size (Dh=64) at small scale; T=30 exercises the
    # sequence-padding + key-masking path (padded to 32).
    B, T, E, H = 2, 30, 256, 4

    key = jax.random.PRNGKey(0)
    keys = jax.random.split(key, 8)
    wscale = 1.0 / math.sqrt(E)
    params = {
        'q_w': jax.random.normal(keys[0], (E, E), jnp.float32) * wscale,
        'q_b': jax.random.normal(keys[1], (E,), jnp.float32) * 0.1,
        'k_w': jax.random.normal(keys[2], (E, E), jnp.float32) * wscale,
        'v_w': jax.random.normal(keys[3], (E, E), jnp.float32) * wscale,
        'v_b': jax.random.normal(keys[4], (E,), jnp.float32) * 0.1,
        'o_w': jax.random.normal(keys[5], (E, E), jnp.float32) * wscale,
        'o_b': jax.random.normal(keys[6], (E,), jnp.float32) * 0.1,
    }
    hidden = jax.random.normal(keys[7], (B, T, E), jnp.float32)

    # small tiles to exercise the multi-k-tile online-softmax loop + masking
    out = whisper_sdpa_attention(hidden, params, num_heads=H,
                                 q_tile=8, k_tile=16)
    out = jax.block_until_ready(out)

    ref = _reference(hidden, params, num_heads=H)
    np.testing.assert_allclose(np.asarray(out), np.asarray(ref),
                               rtol=2e-2, atol=3e-2)
    print("KERNEL_OK")
</pallas_src>

<mosaic_0001>
module attributes {stable_mosaic.version = 11 : i64} {
  func.func @_linear_kernel(%arg0: i32, %arg1: i32, %arg2: i32, %arg3: memref<1x32x256xbf16, #tpu.memory_space<vmem>>, %arg4: memref<256x768xbf16, #tpu.memory_space<vmem>>, %arg5: memref<1x768xf32, #tpu.memory_space<vmem>>, %arg6: memref<1x32x768xbf16, #tpu.memory_space<vmem>>) attributes {dimension_semantics = [#tpu.dimension_semantics<parallel>, #tpu.dimension_semantics<parallel>, #tpu.dimension_semantics<parallel>], iteration_bounds = array<i64: 2, 1, 1>, scalar_prefetch = 0 : i64, scratch_operands = 0 : i64, tpu.core_type = #tpu.core_type<tc>, window_params = [{transform_indices = @transform_0, window_bounds = array<i64: 1, 32, 256>}, {transform_indices = @transform_1, window_bounds = array<i64: 256, 768>}, {transform_indices = @transform_2, window_bounds = array<i64: 1, 768>}, {transform_indices = @transform_3, window_bounds = array<i64: 1, 32, 768>}]} {
    %c0 = arith.constant 0 : index
    %c0_0 = arith.constant 0 : index
    %c0_1 = arith.constant 0 : index
    %0 = vector.load %arg3[%c0, %c0_0, %c0_1] : memref<1x32x256xbf16, #tpu.memory_space<vmem>>, vector<1x32x256xbf16>
    %1 = vector.shape_cast %0 : vector<1x32x256xbf16> to vector<32x256xbf16>
    %c0_2 = arith.constant 0 : index
    %c0_3 = arith.constant 0 : index
    %2 = vector.load %arg4[%c0_2, %c0_3] : memref<256x768xbf16, #tpu.memory_space<vmem>>, vector<256x768xbf16>
    %cst = arith.constant dense<0.000000e+00> : vector<32x768xf32>
    %3 = tpu.matmul %1, %2, %cst {dimension_numbers = #tpu.dot_dimension_numbers<[1], [0], [0], [1], [0, 0, 1, 1], [], []>} : vector<32x256xbf16>, vector<256x768xbf16>, vector<32x768xf32> -> vector<32x768xf32>
    %c0_4 = arith.constant 0 : index
    %c0_5 = arith.constant 0 : index
    %4 = vector.load %arg5[%c0_4, %c0_5] : memref<1x768xf32, #tpu.memory_space<vmem>>, vector<1x768xf32>
    %5 = vector.broadcast %4 : vector<1x768xf32> to vector<32x768xf32>
    %6 = arith.addf %3, %5 : vector<32x768xf32>
    %7 = arith.truncf %6 : vector<32x768xf32> to vector<32x768xbf16>
    %c0_6 = arith.constant 0 : index
    %c0_7 = arith.constant 0 : index
    %c0_8 = arith.constant 0 : index
    %8 = vector.load %arg6[%c0_6, %c0_7, %c0_8] : memref<1x32x768xbf16, #tpu.memory_space<vmem>>, vector<1x32x768xbf16>
    %9 = vector.shape_cast %8 : vector<1x32x768xbf16> to vector<32x768xbf16>
    %10 = vector.shape_cast %7 : vector<32x768xbf16> to vector<1x32x768xbf16>
    tpu.vector_store %arg6[%c0_6, %c0_7, %c0_8], %10 {strides = array<i32>} : memref<1x32x768xbf16, #tpu.memory_space<vmem>>, vector<1x32x768xbf16>,
    return
  }
  func.func @transform_0(%arg0: i32, %arg1: i32, %arg2: i32) -> (i32, i32, i32) {
    %c0_i32 = arith.constant 0 : i32
    %c0_i32_0 = arith.constant 0 : i32
    return %arg0, %arg2, %c0_i32 : i32, i32, i32
  }
  func.func @transform_1(%arg0: i32, %arg1: i32, %arg2: i32) -> (i32, i32) {
    %c0_i32 = arith.constant 0 : i32
    %c0_i32_0 = arith.constant 0 : i32
    return %c0_i32, %arg1 : i32, i32
  }
  func.func @transform_2(%arg0: i32, %arg1: i32, %arg2: i32) -> (i32, i32) {
    %c0_i32 = arith.constant 0 : i32
    %c0_i32_0 = arith.constant 0 : i32
    return %c0_i32, %arg1 : i32, i32
  }
  func.func @transform_3(%arg0: i32, %arg1: i32, %arg2: i32) -> (i32, i32, i32) {
    %c0_i32 = arith.constant 0 : i32
    return %arg0, %arg2, %arg1 : i32, i32, i32
  }
}

</mosaic_0001>

<bundles_post_ra>
// kernel: tpu_custom_call.1
= control target key start
LH: loop header
LB: loop body
LE: loop exit
PB: predicated region body
PF: predicated region fallthrough
CT: control target
= control target key end

     0   :  { %8 = vsyncpa [#allocation3], 0  ;;  %s2121_s0 = inlined_call_operand.hbm [shape: bf16[2,32,256], index: 0, kind: input, shape index: {}]   ;;  %s2122_s1 = inlined_call_operand.hbm [shape: bf16[256,768], index: 1, kind: input, shape index: {}]   ;;  %s2123_s2 = inlined_call_operand.hbm [shape: f32[1,768], index: 2, kind: input, shape index: {}]   ;;  %s2124_s3 = inlined_call_operand.hbm [shape: bf16[2,32,768], index: 3, kind: output, shape index: {}]  }
   0x1   :  { %10 = vsyncpa [#allocation3 + $0x1], 0 }
   0x2   :  { %11 = vsyncpa [#allocation6], 0 }
   0x3   :  { %12 = vsyncpa [#allocation4], 0 }
   0x4   :  { %14 = vsyncpa [#allocation4 + $0x1], 0  ;;  %s1884_s12 = smov 0   ;;  %s1886_s13 = smov 0  }
   0x5   :  { %s1888_s14 = smov 0   ;;  %s1890_s15 = smov 0  }
   0x6   :  { %s1892_s16 = smov 0   ;;  %s1894_s17 = smov 0  }
   0x7 LB: > { %s1274_s18 = sadd.s32 4294967295, %s1852_s17   ;;  %s1275_s19 = sadd.s32 4294967294, %s1852_s17   ;;  %s1852_s17 = sphi %s1894_s17, %s20_s17   ;;  %s1848_s16 = sphi %s1892_s16, %s2144_s16   ;;  %s1844_s15 = sphi %s1890_s15, %s2143_s15   ;;  %s1840_s14 = sphi %s1888_s14, %s2142_s14   ;;  %s1836_s13 = sphi %s1886_s13, %s2141_s13   ;;  %s1832_s12 = sphi %s1884_s12, %s2140_s12  }
   0x8   : > { %p61_p0 = scmp.ne.s32.totalorder %s1836_s13, %s1832_s12  ;;  %p1918_p1 = scmp.eq.s32.totalorder %s1274_s18, 0 }
   0x9   : > { %p1922_p2 = scmp.eq.s32.totalorder %s1274_s18, 1  ;;  %p147_p3 = scmp.eq.s32.totalorder %s1275_s19, 1 }
   0xa   : > { %s2128_s20 = scalar_select %p1918_p1, 1, 0 }
   0xb   : > { %p1928_p4 = por %p1918_p1, %p61_p0  ;;  %p1276_p5 = scmp.ge.s32.totalorder %s1852_s17, 1 }
   0xc   : > { %p1933_p6 = por %p147_p3, %p61_p0  ;;  %p154_p7 = scmp.lt.s32.totalorder %s1852_s17, 3 }
   0xd   : > { %s2130_s22 = scalar_select %p1928_p4, 1, 0 }
   0xe   : > { %s2131_s23 = scalar_select %p1933_p6, 1, 0 }
   0xf   : > { %p1938_p8 = pnand %p1276_p5, %p154_p7  ;;  %s1854_s25 = smov [#allocation5]  }
  0x10   : > { %s169_s26 = sshll.u32 %s1854_s25, 4  ;;  %s1855_s28 = smov [#allocation7]   ;;  %s170_s26 = int_to_ptr.vmem [resolvable:$true] %s169_s26 }
  0x11   : > { %p1461_p9 = pneg %p1938_p8  ;;  %s186_s29 = sshll.u32 %s1855_s28, 4  ;;  %s187_s29 = int_to_ptr.vmem [resolvable:$true] %s186_s29 }
  0x12   : > { %s1699_s30 = scalar_lea.vmem %s170_s26, 12288  ;;  %p1707_p5 = scmp.lt.s32.totalorder %s170_s26, %s170_s26 }
  0x13   : > { %p1947_p11 = pnand %p1461_p9, %p1918_p1  ;;  %p1700_p13 = scmp.ne.s32.totalorder %s170_s26, %s1699_s30 }
  0x14   : > { %p1708_p7 = scmp.lt.s32.totalorder %s1699_s30, %s1699_s30 }
  0x15   : > { %p1690_p12 = pneg %p1947_p11 }
  0x16   : > { %p1709_p10 = por %p1708_p7, %p1707_p5 }
  0x17   : > { %p1702_p0 = pnand %p1700_p13, %p1690_p12 }
  0x19   : > { %p1703_p3 = pneg %p1702_p0 }
  0x1b   : > { %p1710_p9 = pnand %p1709_p10, %p1703_p3 }
  0x1d   : > { %1713 = shalt.err (!%p1710_p9)
}
  0x1e   : > { %s1856_s4 = smov 384   ;;  %s1857_s5 = smov 24  }
  0x1f   : > { %1464 = dma.hbm_to_vmem [thread:$0]  (!%p1947_p11), %s2122_s1, 12288, %s170_s26, [#allocation6], %s1856_s4, %s1856_s4, %s1857_s5  }
  0x20   : > { %s1725_s8 = scalar_lea.vmem %s187_s29, 96  ;;  %p1733_p1 = scmp.lt.s32.totalorder %s187_s29, %s187_s29 }
  0x21   : > { %p1726_p6 = scmp.ne.s32.totalorder %s187_s29, %s1725_s8  ;;  %p1734_p4 = scmp.lt.s32.totalorder %s1725_s8, %s1725_s8 }
  0x23   : > { %p1728_p13 = pnand %p1726_p6, %p1690_p12  ;;  %p1735_p5 = por %p1734_p4, %p1733_p1 }
  0x25   : > { %p1729_p0 = pneg %p1728_p13 }
  0x27   : > { %p1736_p10 = pnand %p1735_p5, %p1729_p0 }
  0x29   : > { %1739 = shalt.err (!%p1736_p10)
}
  0x2a   : > { %1467 = dma.hbm_to_vmem [thread:$0]  (!%p1947_p11), %s2123_s2, 96, %s187_s29, [#allocation6]  }
  0x2b   : > { %s39_s11 = sadd.s32 1, %s1848_s16  ;;  %s48_s18 = sadd.s32 1, %s1840_s14 }
  0x2c   : > { %p41_p1 = scmp.ge.s32.totalorder %s39_s11, 2  ;;  %p55_p4 = scmp.ne.s32.totalorder %s1840_s14, %s1836_s13 }
  0x2d   : > { %p56_p6 = scmp.eq.s32.totalorder %s1852_s17, 0  ;;  %p1478_p12 = scmp.lt.s32.totalorder %s1852_s17, 2 }
  0x2e   : > { %s2146_s11 = smov (%p41_p1, %s39_s11), 0  ;;  %p1979_p7 = por %p1922_p2, %p55_p4 }
  0x2f   : > { %p57_p3 = por %p56_p6, %p55_p4  ;;  %s43_s25 = ssub.s32 %s1848_s16, %s2146_s11 }
  0x30   : > { %s197_s26 = sand.u32 1, %s1840_s14   ;;  %p46_p9 = scmp.eq.s32.totalorder %s43_s25, 0 }
  0x31   : > { %s1280_s27 = sshll.u32 %s197_s26, 5  ;;  %s1402_s28 = sshll.u32 %s1848_s16, 9 }
  0x32   : > { %s1988_s29 = scalar_select %p46_p9, %s1840_s14, %s48_s18  }
  0x33   : > { %s210_s5 = scalar_lea.hbm %s2121_s0, %s1402_s28  ;;  %s201_s6 = scalar_lea.vmem [#allocation2], %s1280_s27 }
  0x34   : > { %s211_s7 = sshll.u32 %s201_s6, 4  ;;  %p1995_p11 = pnand %p1478_p12, %p57_p3  ;;  %s212_s7 = int_to_ptr.vmem [resolvable:$true] %s211_s7 }
  0x35   : > { %s198_s8 = scalar_lea.sflag [#allocation3], %s197_s26  ;;  %s1753_s9 = scalar_lea.vmem %s212_s7, 512 }
  0x36   : > { %p1742_p2 = pneg %p1995_p11  ;;  %p1754_p13 = scmp.ne.s32.totalorder %s212_s7, %s1753_s9 }
  0x37   : > { %s1858_s10 = smov [#allocation2]  }
  0x38   : > { %p1756_p0 = pnand %p1754_p13, %p1742_p2  ;;  %s1758_s18 = sshll.u32 %s1858_s10, 4  ;;  %s1759_s18 = int_to_ptr.vmem [resolvable:$false] %s1758_s18 }
  0x39   : > { %s1760_s25 = scalar_lea.vmem %s1759_s18, 1024  ;;  %p1761_p10 = scmp.lt.s32.totalorder %s212_s7, %s1759_s18 }
  0x3a   : > { %p1757_p5 = pneg %p1756_p0  ;;  %p1762_p1 = scmp.lt.s32.totalorder %s1760_s25, %s1753_s9 }
  0x3c   : > { %p1763_p4 = por %p1762_p1, %p1761_p10 }
  0x3e   : > { %p1764_p6 = pnand %p1763_p4, %p1757_p5 }
  0x40   : > { %1767 = shalt.err (!%p1764_p6)
}
  0x41   : > { %s1859_s27 = smov 128   ;;  %s1860_s28 = smov 8  }
  0x42   : > { %1471 = dma.hbm_to_vmem [thread:$0]  (!%p1995_p11), %s210_s5, 512, %s212_s7, %s198_s8, %s1859_s27, %s1859_s27, %s1860_s28  }
  0x43   : > { %223 = sbr.rel (%p1938_p8) target bundleno = 423 (0x1a7), region = 32  ;;  %s2006_s26 = sand.u32 (!%p1938_p8), 1, %s1836_s13  }
  0x44   : > { %s1284_s30 = sshll.u32 (!%p1938_p8), %s2006_s26, 5  ;;  %s226_s4 = scalar_lea.sflag (!%p1938_p8), [#allocation3], %s2006_s26 }
  0x45   : > { %s2010_s6 = scalar_lea.vmem (!%p1938_p8), [#allocation2], %s1284_s30  ;;  %p2136_p12 = scmp.ne.s32.totalorder (!%p1938_p8), %s2130_s22, 0 }
  0x48   : > { %1819 = dma.done.wait (%p2136_p12), %s226_s4, 512  }
  0x49   : > { %1821 = vsyncadd (%p2136_p12), %s226_s4, 4294966784  ;;  %p2137_p3 = scmp.ne.s32.totalorder %s2128_s20, 0 }
  0x4b   : > { %1823 = dma.done.wait (%p2137_p3), [#allocation6], 12384  }
  0x4c   : > { %1825 = vsyncadd (%p2137_p3), [#allocation6], 4294954912  ;;  %v1538_v0 = vld [vmem:[#allocation5 + $0x154] ss:$24 sps:$4 sm:$0xff]   ;;  %v1542_v2 = vld [vmem:[#allocation5 + $0x150] ss:$24 sps:$4 sm:$0xff]  }
  0x4d   : > { %v1540_v1 = vld [vmem:[#allocation5 + $0x15c] ss:$24 sps:$4 sm:$0xff]   ;;  %897 = vmatprep.subr.bf16.mxu0 %v1538_v0  ;;  %v1543_v3 = vld [vmem:[#allocation5 + $0x158] ss:$24 sps:$4 sm:$0xff]   ;;  %v1546_v5 = vld [vmem:[#allocation5 + $0x12c] ss:$24 sps:$4 sm:$0xff]  }
  0x4e   : > { %950 = vmatprep.subr.bf16.mxu1 %v1540_v1  ;;  %v1544_v4 = vld [vmem:[#allocation5 + $0x124] ss:$24 sps:$4 sm:$0xff]   ;;  %898 = vmatpush1.bf16.msra.mxu0 %v1542_v2  ;;  %v1548_v6 = vld [vmem:[#allocation5 + $0x120] ss:$24 sps:$4 sm:$0xff]   ;;  %v1550_v8 = vld [vmem:[#allocation5 + $0xf4] ss:$24 sps:$4 sm:$0xff]  }
  0x4f   : > { %951 = vmatpush1.bf16.msra.mxu1 %v1543_v3  ;;  %899 = vmatprep.subr.bf16.mxu0 %v1544_v4  ;;  %v1549_v7 = vld [vmem:[#allocation5 + $0x128] ss:$24 sps:$4 sm:$0xff]   ;;  %v1552_v9 = vld [vmem:[#allocation5 + $0xfc] ss:$24 sps:$4 sm:$0xff]   ;;  %v1555_v11 = vld [vmem:[#allocation5 + $0xf8] ss:$24 sps:$4 sm:$0xff]  }
  0x50   : > { %952 = vmatprep.subr.bf16.mxu1 %v1546_v5  ;;  %v1554_v10 = vld [vmem:[#allocation5 + $0xf0] ss:$24 sps:$4 sm:$0xff]   ;;  %v1556_v12 = vld [vmem:[#allocation5 + $0xc4] ss:$24 sps:$4 sm:$0xff]   ;;  %v1560_v14 = vld [vmem:[#allocation5 + $0xc0] ss:$24 sps:$4 sm:$0xff]  }
  0x51   : > { %v1558_v13 = vld [vmem:[#allocation5 + $0xcc] ss:$24 sps:$4 sm:$0xff]   ;;  %v1561_v15 = vld [vmem:[#allocation5 + $0xc8] ss:$24 sps:$4 sm:$0xff]   ;;  %v1564_v17 = vld [vmem:[#allocation5 + $0x9c] ss:$24 sps:$4 sm:$0xff]  }
  0x52   : > { %900 = vmatpush1.bf16.msra.mxu0 %v1548_v6  ;;  %v1562_v16 = vld [vmem:[#allocation5 + $0x94] ss:$24 sps:$4 sm:$0xff]   ;;  %v1566_v18 = vld [vmem:[#allocation5 + $0x90] ss:$24 sps:$4 sm:$0xff]   ;;  %v1568_v20 = vld [vmem:[#allocation5 + $0x64] ss:$24 sps:$4 sm:$0xff]  }
  0x53   : > { %953 = vmatpush1.bf16.msra.mxu1 %v1549_v7  ;;  %901 = vmatprep.subr.bf16.mxu0 %v1550_v8  ;;  %v1567_v19 = vld [vmem:[#allocation5 + $0x98] ss:$24 sps:$4 sm:$0xff]   ;;  %v1570_v21 = vld [vmem:[#allocation5 + $0x6c] ss:$24 sps:$4 sm:$0xff]   ;;  %v1573_v23 = vld [vmem:[#allocation5 + $0x68] ss:$24 sps:$4 sm:$0xff]  }
  0x54   : > { %954 = vmatprep.subr.bf16.mxu1 %v1552_v9  ;;  %v1572_v22 = vld [vmem:[#allocation5 + $0x60] ss:$24 sps:$4 sm:$0xff]   ;;  %v1574_v24 = vld [vmem:[#allocation5 + $0x34] ss:$24 sps:$4 sm:$0xff]   ;;  %v1578_v26 = vld [vmem:[#allocation5 + $0x30] ss:$24 sps:$4 sm:$0xff]  }
  0x55   : > { %v1576_v25 = vld [vmem:[#allocation5 + $0x3c] ss:$24 sps:$4 sm:$0xff]   ;;  %v1579_v27 = vld [vmem:[#allocation5 + $0x38] ss:$24 sps:$4 sm:$0xff]   ;;  %v1582_v29 = vld [vmem:[#allocation5 + $0xc] ss:$24 sps:$4 sm:$0xff]  }
  0x56   : > { %902 = vmatpush1.bf16.msra.mxu0 %v1554_v10  ;;  %v1580_v28 = vld [vmem:[#allocation5 + $0x4] ss:$24 sps:$4 sm:$0xff]   ;;  %v1584_v30 = vld [vmem:[#allocation5] ss:$24 sps:$4 sm:$0xff]   ;;  %v1586_v32 = vld [vmem:[#allocation5 + $0x2d4] ss:$24 sps:$4 sm:$0xff]  }
  0x57   : > { %955 = vmatpush1.bf16.msra.mxu1 %v1555_v11  ;;  %903 = vmatprep.subr.bf16.mxu0 %v1556_v12  ;;  %v1585_v31 = vld [vmem:[#allocation5 + $0x8] ss:$24 sps:$4 sm:$0xff]   ;;  %v1588_v33 = vld [vmem:[#allocation5 + $0x2dc] ss:$24 sps:$4 sm:$0xff]   ;;  %v1591_v35 = vld [vmem:[#allocation5 + $0x2d8] ss:$24 sps:$4 sm:$0xff]  }
  0x58   : > { %956 = vmatprep.subr.bf16.mxu1 %v1558_v13  ;;  %v1590_v34 = vld [vmem:[#allocation5 + $0x2d0] ss:$24 sps:$4 sm:$0xff]   ;;  %v1592_v36 = vld [vmem:[#allocation5 + $0x2a4] ss:$24 sps:$4 sm:$0xff]   ;;  %v1596_v38 = vld [vmem:[#allocation5 + $0x2a0] ss:$24 sps:$4 sm:$0xff]  }
  0x59   : > { %v1594_v37 = vld [vmem:[#allocation5 + $0x2ac] ss:$24 sps:$4 sm:$0xff]   ;;  %v1597_v39 = vld [vmem:[#allocation5 + $0x2a8] ss:$24 sps:$4 sm:$0xff]   ;;  %v1600_v41 = vld [vmem:[#allocation5 + $0x27c] ss:$24 sps:$4 sm:$0xff]  }
  0x5a   : > { %904 = vmatpush1.bf16.msra.mxu0 %v1560_v14  ;;  %v1598_v40 = vld [vmem:[#allocation5 + $0x274] ss:$24 sps:$4 sm:$0xff]   ;;  %v1602_v42 = vld [vmem:[#allocation5 + $0x270] ss:$24 sps:$4 sm:$0xff]   ;;  %v1604_v44 = vld [vmem:[#allocation5 + $0x244] ss:$24 sps:$4 sm:$0xff]  }
  0x5b   : > { %957 = vmatpush1.bf16.msra.mxu1 %v1561_v15  ;;  %905 = vmatprep.subr.bf16.mxu0 %v1562_v16  ;;  %v1603_v43 = vld [vmem:[#allocation5 + $0x278] ss:$24 sps:$4 sm:$0xff]   ;;  %v1606_v45 = vld [vmem:[#allocation5 + $0x24c] ss:$24 sps:$4 sm:$0xff]   ;;  %v1609_v47 = vld [vmem:[#allocation5 + $0x248] ss:$24 sps:$4 sm:$0xff]  }
  0x5c   : > { %958 = vmatprep.subr.bf16.mxu1 %v1564_v17  ;;  %v1608_v46 = vld [vmem:[#allocation5 + $0x240] ss:$24 sps:$4 sm:$0xff]   ;;  %v2021_v48 = vld [vmem:[%s2010_s6 + $0x4] ss:$8 sps:$4 sm:$0xff]   ;;  %v1612_v50 = vld [vmem:[#allocation5 + $0x21c] ss:$24 sps:$4 sm:$0xff]  }
  0x5d   : > { %v1610_v49 = vld [vmem:[#allocation5 + $0x214] ss:$24 sps:$4 sm:$0xff]   ;;  %929 = vmatprep.mubr.bf16.mxu0 %v2021_v48  ;;  %982 = vmatprep.mubr.bf16.mxu1 %v2021_v48  ;;  %v1614_v51 = vld [vmem:[#allocation5 + $0x210] ss:$24 sps:$4 sm:$0xff]   ;;  %v1616_v53 = vld [vmem:[#allocation5 + $0x1e4] ss:$24 sps:$4 sm:$0xff]  }
  0x5e   : > { %906 = vmatpush1.bf16.msra.mxu0 %v1566_v18  ;;  %v1615_v52 = vld [vmem:[#allocation5 + $0x218] ss:$24 sps:$4 sm:$0xff]   ;;  %v1618_v54 = vld [vmem:[#allocation5 + $0x1ec] ss:$24 sps:$4 sm:$0xff]   ;;  %v1621_v56 = vld [vmem:[#allocation5 + $0x1e8] ss:$24 sps:$4 sm:$0xff]  }
  0x5f   : > { %959 = vmatpush1.bf16.msra.mxu1 %v1567_v19  ;;  %907 = vmatprep.subr.bf16.mxu0 %v1568_v20  ;;  %v1620_v55 = vld [vmem:[#allocation5 + $0x1e0] ss:$24 sps:$4 sm:$0xff]   ;;  %v1622_v57 = vld [vmem:[#allocation5 + $0x1b4] ss:$24 sps:$4 sm:$0xff]   ;;  %v1626_v59 = vld [vmem:[#allocation5 + $0x1b0] ss:$24 sps:$4 sm:$0xff]  }
  0x60   : > { %960 = vmatprep.subr.bf16.mxu1 %v1570_v21  ;;  %v1624_v58 = vld [vmem:[#allocation5 + $0x1bc] ss:$24 sps:$4 sm:$0xff]   ;;  %v1627_v60 = vld [vmem:[#allocation5 + $0x1b8] ss:$24 sps:$4 sm:$0xff]   ;;  %v1630_v62 = vld [vmem:[#allocation5 + $0x18c] ss:$24 sps:$4 sm:$0xff]  }
  0x61   : > { %v1628_v61 = vld [vmem:[#allocation5 + $0x184] ss:$24 sps:$4 sm:$0xff]   ;;  %v1632_v63 = vld [vmem:[#allocation5 + $0x180] ss:$24 sps:$4 sm:$0xff]   ;;  %v1642_v4 = vld [vmem:[#allocation5 + $0x134] ss:$24 sps:$4 sm:$0xff]  }
  0x62   : > { %908 = vmatpush1.bf16.msra.mxu0 %v1572_v22  ;;  %v1633_v0 = vld [vmem:[#allocation5 + $0x188] ss:$24 sps:$4 sm:$0xff]   ;;  %v1639_v1 = vld [vmem:[#allocation5 + $0x164] ss:$24 sps:$4 sm:$0xff]   ;;  %v2032_v8 = vld [vmem:[%s2010_s6 + $0x10] ss:$8 sps:$4 sm:$0xff]  }
  0x63   : > { %961 = vmatpush1.bf16.msra.mxu1 %v1573_v23  ;;  %909 = vmatprep.subr.bf16.mxu0 %v1574_v24  ;;  %v2026_v2 = vld [vmem:[%s2010_s6] ss:$8 sps:$4 sm:$0xff]   ;;  %v1676_v5 = vld [vmem:[%s2010_s6 + $0x14] ss:$8 sps:$4 sm:$0xff]   ;;  %s1447_s20 = smul.u32 96, %s2006_s26  ;;  %s1141_s8 = scalar_lea.sflag [#allocation4], %s2006_s26 }
  0x64   : > { %962 = vmatprep.subr.bf16.mxu1 %v1576_v25  ;;  %v1637_v3 = vld [vmem:[#allocation5 + $0x160] ss:$24 sps:$4 sm:$0xff]   ;;  %v1640_v6 = vld [vmem:[#allocation5 + $0x130] ss:$24 sps:$4 sm:$0xff]   ;;  %v1645_v7 = vld [vmem:[#allocation5 + $0x104] ss:$24 sps:$4 sm:$0xff]  }
  0x65   : > { %v1643_v9 = vld [vmem:[#allocation5 + $0x100] ss:$24 sps:$4 sm:$0xff]   ;;  %v1648_v10 = vld [vmem:[#allocation5 + $0xd4] ss:$24 sps:$4 sm:$0xff]   ;;  %v1646_v11 = vld [vmem:[#allocation5 + $0xd0] ss:$24 sps:$4 sm:$0xff]  }
  0x66   : > { %910 = vmatpush1.bf16.msra.mxu0 %v1578_v26  ;;  %v1651_v12 = vld [vmem:[#allocation5 + $0xa4] ss:$24 sps:$4 sm:$0xff]   ;;  %v1649_v13 = vld [vmem:[#allocation5 + $0xa0] ss:$24 sps:$4 sm:$0xff]   ;;  %v1654_v14 = vld [vmem:[#allocation5 + $0x74] ss:$24 sps:$4 sm:$0xff]  }
  0x67   : > { %963 = vmatpush1.bf16.msra.mxu1 %v1579_v27  ;;  %911 = vmatprep.subr.bf16.mxu0 %v1580_v28  ;;  %v1652_v15 = vld [vmem:[#allocation5 + $0x70] ss:$24 sps:$4 sm:$0xff]   ;;  %v1657_v16 = vld [vmem:[#allocation5 + $0x44] ss:$24 sps:$4 sm:$0xff]   ;;  %v1655_v17 = vld [vmem:[#allocation5 + $0x40] ss:$24 sps:$4 sm:$0xff]  }
  0x68   : > { %964 = vmatprep.subr.bf16.mxu1 %v1582_v29  ;;  %v1660_v18 = vld [vmem:[#allocation5 + $0x14] ss:$24 sps:$4 sm:$0xff]   ;;  %v1658_v19 = vld [vmem:[#allocation5 + $0x10] ss:$24 sps:$4 sm:$0xff]   ;;  %v1663_v20 = vld [vmem:[#allocation5 + $0x2e4] ss:$24 sps:$4 sm:$0xff]  }
  0x69   : > { %v1661_v21 = vld [vmem:[#allocation5 + $0x2e0] ss:$24 sps:$4 sm:$0xff]   ;;  %v1666_v22 = vld [vmem:[#allocation5 + $0x2b4] ss:$24 sps:$4 sm:$0xff]   ;;  %v1664_v23 = vld [vmem:[#allocation5 + $0x2b0] ss:$24 sps:$4 sm:$0xff]  }
  0x6a   : > { %912 = vmatpush1.bf16.msra.mxu0 %v1584_v30  ;;  %v1669_v24 = vld [vmem:[#allocation5 + $0x284] ss:$24 sps:$4 sm:$0xff]   ;;  %v1667_v25 = vld [vmem:[#allocation5 + $0x280] ss:$24 sps:$4 sm:$0xff]   ;;  %v1672_v26 = vld [vmem:[#allocation5 + $0x254] ss:$24 sps:$4 sm:$0xff]  }
  0x6b   : > { %965 = vmatpush1.bf16.msra.mxu1 %v1585_v31  ;;  %913 = vmatprep.subr.bf16.mxu0 %v1586_v32  ;;  %v1670_v27 = vld [vmem:[#allocation5 + $0x250] ss:$24 sps:$4 sm:$0xff]   ;;  %v1675_v28 = vld [vmem:[#allocation5 + $0x224] ss:$24 sps:$4 sm:$0xff]   ;;  %v1673_v29 = vld [vmem:[#allocation5 + $0x220] ss:$24 sps:$4 sm:$0xff]  }
  0x6c   : > { %966 = vmatprep.subr.bf16.mxu1 %v1588_v33  ;;  %v1681_v30 = vld [vmem:[#allocation5 + $0x1f4] ss:$24 sps:$4 sm:$0xff]   ;;  %v1679_v31 = vld [vmem:[#allocation5 + $0x1f0] ss:$24 sps:$4 sm:$0xff]   ;;  %v1684_v32 = vld [vmem:[#allocation5 + $0x1c4] ss:$24 sps:$4 sm:$0xff]  }
  0x6d   : > { %v1682_v33 = vld [vmem:[#allocation5 + $0x1c0] ss:$24 sps:$4 sm:$0xff]   ;;  %s2044_s22 = scalar_lea.vmem [#allocation8], %s1447_s20  ;;  %s1448_s24 = smul.u32 1536, %s1844_s15 }
  0x6e   : > { %914 = vmatpush2.bf16.msra.mxu0 %v1590_v34  ;;  %v1687_v34 = vld [vmem:[#allocation5 + $0x194] ss:$24 sps:$4 sm:$0xff]   ;;  %s1159_s5 = sshll.u32 %s2044_s22, 4  ;;  %s1861_s10 = smov [#allocation8]   ;;  %s2071_s5 = int_to_ptr.vmem [resolvable:$true] %s1159_s5 }
  0x6f   : > { %967 = vmatpush2.bf16.msra.mxu1 %v1591_v35  ;;  %915 = vmatprep.subr.bf16.mxu0 %v1592_v36  ;;  %v1685_v35 = vld [vmem:[#allocation5 + $0x190] ss:$24 sps:$4 sm:$0xff]   ;;  %v367_v36 = vlaneseq  ;;  %s2069_s21 = scalar_lea.hbm %s2124_s3, %s1448_s24  ;;  %s1768_s9 = scalar_lea.vmem %s2071_s5, 1536 }
  0x70   : > { %968 = vmatprep.subr.bf16.mxu1 %v1594_v37  ;;  %p1769_p8 = scmp.ne.s32.totalorder %s2071_s5, %s1768_s9  ;;  %s1772_s18 = sshll.u32 %s1861_s10, 4  ;;  %s1773_s18 = int_to_ptr.vmem [resolvable:$false] %s1772_s18 }
  0x71   : > { %v368_v37 = vshrl.u32 %v367_v36, 7  ;;  %s1774_s25 = scalar_lea.vmem %s1773_s18, 3072  ;;  %p1775_p2 = scmp.lt.s32.totalorder %s2071_s5, %s1773_s18 }
  0x72   : > { %916 = vmatpush2.bf16.msra.mxu0 %v1596_v38  ;;  %p1770_p9 = pnand %p1769_p8, %p1979_p7  ;;  %p1776_p13 = scmp.lt.s32.totalorder %s1774_s25, %s1768_s9 }
  0x73   : > { %969 = vmatpush2.bf16.msra.mxu1 %v1597_v39  ;;  %917 = vmatprep.subr.bf16.mxu0 %v1598_v40  ;;  %v385_v38 = vsub.s32 4, %v368_v37  ;;  %v365_v39 = vld [vmem:[#allocation7] sm:$0x3f] }
  0x74   : > { %970 = vmatprep.subr.bf16.mxu1 %v1600_v41  ;;  %v389_v41 = vsub.s32 5, %v368_v37  ;;  %p1771_p11 = pneg %p1770_p9  ;;  %p1777_p0 = por %p1776_p13, %p1775_p2 }
  0x75   : > { %v2039_v40 = vrot.slane %v365_v39, %v385_v38 }
  0x76   : > { %918 = vmatpush2.bf16.msra.mxu0 %v1602_v42  ;;  %v2041_v42 = vrot.slane %v365_v39, %v389_v41  ;;  %p1778_p5 = pnand %p1777_p0, %p1771_p11 }
  0x77   : > { %971 = vmatpush2.bf16.msra.mxu1 %v1603_v43  ;;  %919 = vmatprep.subr.bf16.mxu0 %v1604_v44  ;;  %v369_v43 = vsub.s32 0, %v368_v37  ;;  %v377_v44 = vsub.s32 2, %v368_v37 }
  0x78   : > { %972 = vmatprep.subr.bf16.mxu1 %v1606_v45  ;;  %v373_v45 = vsub.s32 1, %v368_v37 }
  0x7a   : > { %920 = vmatpush2.bf16.msra.mxu0 %v1608_v46  ;;  %v381_v46 = vsub.s32 3, %v368_v37 }
  0x7b   : > { %973 = vmatpush2.bf16.msra.mxu1 %v1609_v47  ;;  %921 = vmatprep.subr.bf16.mxu0 %v1610_v49  ;;  %v370_v47 = vrot.slane %v365_v39, %v369_v43  ;;  %v374_v49 = vrot.slane %v365_v39, %v373_v45 }
  0x7c   : > { %974 = vmatprep.subr.bf16.mxu1 %v1612_v50  ;;  %v382_v50 = vrot.slane %v365_v39, %v381_v46 }
  0x7e   : > { %922 = vmatpush2.bf16.msra.mxu0 %v1614_v51 }
  0x7f   : > { %975 = vmatpush2.bf16.msra.mxu1 %v1615_v52  ;;  %923 = vmatprep.subr.bf16.mxu0 %v1616_v53 }
  0x80   : > { %976 = vmatprep.subr.bf16.mxu1 %v1618_v54 }
  0x82   : > { %924 = vmatpush2.bf16.msra.mxu0 %v1620_v55 }
  0x83   : > { %977 = vmatpush2.bf16.msra.mxu1 %v1621_v56  ;;  %925 = vmatprep.subr.bf16.mxu0 %v1622_v57 }
  0x84   : > { %978 = vmatprep.subr.bf16.mxu1 %v1624_v58 }
  0x86   : > { %926 = vmatpush2.bf16.msra.mxu0 %v1626_v59 }
  0x87   : > { %979 = vmatpush2.bf16.msra.mxu1 %v1627_v60  ;;  %927 = vmatprep.subr.bf16.mxu0 %v1628_v61 }
  0x88   : > { %980 = vmatprep.subr.bf16.mxu1 %v1630_v62 }
  0x8a   : > { %928 = vmatpush2.bf16.msra.mxu0 %v1632_v63 }
  0x8b   : > { %981 = vmatpush2.bf16.msra.mxu1 %v1633_v0  ;;  %1003 = vmatprep.subr.bf16.mxu0 %v1639_v1 }
  0x8c   : > { %1415 = vmatprep.subr.bf16.mxu1 %v1639_v1 }
  0x8d   : > { %930 = vmatmul.mubr.bf16.vlgmr.msra.gmra.mxu0 %v2026_v2 }
  0x8e   : > { %983 = vmatmul.mubr.bf16.vlgmr.msra.gmra.mxu1 %v2026_v2  ;;  %1004 = vmatpush1.bf16.msra.mxu0 %v1637_v3 }
  0x8f   : > { %1431 = vmatpush1.bf16.msra.mxu1 %v1637_v3  ;;  %1005 = vmatprep.subr.bf16.mxu0 %v1642_v4 }
  0x90   : > { %1416 = vmatprep.subr.bf16.mxu1 %v1642_v4  ;;  %939 = vmatprep.mubr.bf16.mxu0 %v1676_v5 }
  0x91   : > { %992 = vmatprep.mubr.bf16.mxu1 %v1676_v5 }
  0x92   : > { %1006 = vmatpush1.bf16.msra.mxu0 %v1640_v6 }
  0x93   : > { %1432 = vmatpush1.bf16.msra.mxu1 %v1640_v6  ;;  %1007 = vmatprep.subr.bf16.mxu0 %v1645_v7 }
  0x94   : > { %1417 = vmatprep.subr.bf16.mxu1 %v1645_v7 }
  0x95   : > { %940 = vmatmul.mubr.bf16.gmra.mxu0 %v2032_v8 }
  0x96   : > { %993 = vmatmul.mubr.bf16.gmra.mxu1 %v2032_v8  ;;  %1008 = vmatpush1.bf16.msra.mxu0 %v1643_v9 }
  0x97   : > { %1433 = vmatpush1.bf16.msra.mxu1 %v1643_v9  ;;  %1009 = vmatprep.subr.bf16.mxu0 %v1648_v10 }
  0x98   : > { %1418 = vmatprep.subr.bf16.mxu1 %v1648_v10  ;;  %1035 = vmatprep.mubr.bf16.mxu0 %v2021_v48  ;;  %v378_v48 = vrot.slane %v365_v39, %v377_v44 }
  0x99   : > { %1045 = vmatprep.mubr.bf16.mxu1 %v1676_v5 }
  0x9a   : > { %1010 = vmatpush1.bf16.msra.mxu0 %v1646_v11 }
  0x9b   : > { %1434 = vmatpush1.bf16.msra.mxu1 %v1646_v11  ;;  %1011 = vmatprep.subr.bf16.mxu0 %v1651_v12 }
  0x9c   : > { %1419 = vmatprep.subr.bf16.mxu1 %v1651_v12 }
  0x9e   : > { %1012 = vmatpush1.bf16.msra.mxu0 %v1649_v13 }
  0x9f   : > { %1435 = vmatpush1.bf16.msra.mxu1 %v1649_v13  ;;  %1013 = vmatprep.subr.bf16.mxu0 %v1654_v14 }
  0xa0   : > { %1420 = vmatprep.subr.bf16.mxu1 %v1654_v14 }
  0xa2   : > { %1014 = vmatpush1.bf16.msra.mxu0 %v1652_v15 }
  0xa3   : > { %1436 = vmatpush1.bf16.msra.mxu1 %v1652_v15  ;;  %1015 = vmatprep.subr.bf16.mxu0 %v1657_v16 }
  0xa4   : > { %1421 = vmatprep.subr.bf16.mxu1 %v1657_v16 }
  0xa6   : > { %1016 = vmatpush1.bf16.msra.mxu0 %v1655_v17 }
  0xa7   : > { %1437 = vmatpush1.bf16.msra.mxu1 %v1655_v17  ;;  %1017 = vmatprep.subr.bf16.mxu0 %v1660_v18 }
  0xa8   : > { %1422 = vmatprep.subr.bf16.mxu1 %v1660_v18 }
  0xaa   : > { %1018 = vmatpush1.bf16.msra.mxu0 %v1658_v19 }
  0xab   : > { %1438 = vmatpush1.bf16.msra.mxu1 %v1658_v19  ;;  %1019 = vmatprep.subr.bf16.mxu0 %v1663_v20 }
  0xac   : > { %1423 = vmatprep.subr.bf16.mxu1 %v1663_v20 }
  0xae   : > { %1020 = vmatpush2.bf16.msra.mxu0 %v1661_v21 }
  0xaf   : > { %1439 = vmatpush2.bf16.msra.mxu1 %v1661_v21  ;;  %1021 = vmatprep.subr.bf16.mxu0 %v1666_v22 }
  0xb0   : > { %1424 = vmatprep.subr.bf16.mxu1 %v1666_v22 }
  0xb2   : > { %1022 = vmatpush2.bf16.msra.mxu0 %v1664_v23 }
  0xb3   : > { %1440 = vmatpush2.bf16.msra.mxu1 %v1664_v23  ;;  %1023 = vmatprep.subr.bf16.mxu0 %v1669_v24 }
  0xb4   : > { %1425 = vmatprep.subr.bf16.mxu1 %v1669_v24 }
  0xb6   : > { %1024 = vmatpush2.bf16.msra.mxu0 %v1667_v25 }
  0xb7   : > { %1441 = vmatpush2.bf16.msra.mxu1 %v1667_v25  ;;  %1025 = vmatprep.subr.bf16.mxu0 %v1672_v26 }
  0xb8   : > { %1426 = vmatprep.subr.bf16.mxu1 %v1672_v26 }
  0xba   : > { %1026 = vmatpush2.bf16.msra.mxu0 %v1670_v27 }
  0xbb   : > { %1442 = vmatpush2.bf16.msra.mxu1 %v1670_v27  ;;  %1027 = vmatprep.subr.bf16.mxu0 %v1675_v28 }
  0xbc   : > { %1427 = vmatprep.subr.bf16.mxu1 %v1675_v28 }
  0xbe   : > { %1028 = vmatpush2.bf16.msra.mxu0 %v1673_v29 }
  0xbf   : > { %1443 = vmatpush2.bf16.msra.mxu1 %v1673_v29  ;;  %1029 = vmatprep.subr.bf16.mxu0 %v1681_v30 }
  0xc0   : > { %1428 = vmatprep.subr.bf16.mxu1 %v1681_v30 }
  0xc2   : > { %1030 = vmatpush2.bf16.msra.mxu0 %v1679_v31 }
  0xc3   : > { %1444 = vmatpush2.bf16.msra.mxu1 %v1679_v31  ;;  %1031 = vmatprep.subr.bf16.mxu0 %v1684_v32 }
  0xc4   : > { %1429 = vmatprep.subr.bf16.mxu1 %v1684_v32 }
  0xc6   : > { %1032 = vmatpush2.bf16.msra.mxu0 %v1682_v33 }
  0xc7   : > { %1445 = vmatpush2.bf16.msra.mxu1 %v1682_v33  ;;  %1033 = vmatprep.subr.bf16.mxu0 %v1687_v34 }
  0xc8   : > { %1430 = vmatprep.subr.bf16.mxu1 %v1687_v34 }
  0xca   : > { %1034 = vmatpush2.bf16.msra.mxu0 %v1685_v35 }
  0xcb   : > { %1446 = vmatpush2.bf16.msra.mxu1 %v1685_v35 }
  0xcd   : > { %1036 = vmatmul.mubr.bf16.vlgmr.msra.gmra.mxu0 %v2026_v2 }
  0xce   : > { %1046 = vmatmul.mubr.bf16.vlgmr.msra.gmra.mxu1 %v2032_v8 }
 0x14d   : > { %v931_v51 = vpop.f32.mrf.mxu0 }
 0x14e   : > { %v984_v52 = vpop.f32.mrf.mxu1  ;;  %v932_v53 = vadd.f32 %v931_v51, %v370_v47 }
 0x14f   : > { %v985_v54 = vadd.f32 %v984_v52, %v378_v48  ;;  %v933_v55 = vpop.f32.mrf.mxu0 }
 0x150   : > { %v986_v56 = vpop.f32.mrf.mxu1  ;;  %v934_v57 = vadd.f32 %v933_v55, %v374_v49 }
 0x151   : > { %v987_v58 = vadd.f32 %v986_v56, %v382_v50  ;;  %v935_v59 = vpop.f32.mrf.mxu0 }
 0x152   : > { %v988_v60 = vpop.f32.mrf.mxu1  ;;  %v1403_v61 = vpack.c.bf16 %v934_v57, %v932_v53  ;;  %v936_v1 = vadd.f32 %v935_v59, %v370_v47 }
 0x153   : > { %v1404_v62 = vpack.c.bf16 %v987_v58, %v985_v54  ;;  %v937_v63 = vpop.f32.mrf.mxu0  ;;  %v989_v2 = vadd.f32 %v988_v60, %v378_v48 }
 0x154   : > { %v990_v0 = vpop.f32.mrf.mxu1  ;;  %1128 = vst [vmem:[%s2044_s22] sm:$0xff] %v1403_v61  ;;  %v938_v3 = vadd.f32 %v937_v63, %v374_v49 }
 0x155   : > { %1129 = vst [vmem:[%s2044_s22 + $0x8] sm:$0xff] %v1404_v62  ;;  %v991_v4 = vadd.f32 %v990_v0, %v382_v50  ;;  %v941_v5 = vpop.f32.mrf.mxu0 }
 0x156   : > { %v994_v6 = vpop.f32.mrf.mxu1  ;;  %v1406_v7 = vpack.c.bf16 %v938_v3, %v936_v1  ;;  %v942_v9 = vadd.f32 %v941_v5, %v370_v47 }
 0x157   : > { %v1407_v8 = vpack.c.bf16 %v991_v4, %v989_v2  ;;  %v995_v10 = vadd.f32 %v994_v6, %v378_v48  ;;  %v943_v11 = vpop.f32.mrf.mxu0 }
 0x158   : > { %v996_v12 = vpop.f32.mrf.mxu1  ;;  %1131 = vst [vmem:[%s2044_s22 + $0x18] sm:$0xff] %v1406_v7  ;;  %v944_v13 = vadd.f32 %v943_v11, %v374_v49 }
 0x159   : > { %1132 = vst [vmem:[%s2044_s22 + $0x20] sm:$0xff] %v1407_v8  ;;  %v997_v14 = vadd.f32 %v996_v12, %v382_v50  ;;  %v945_v15 = vpop.f32.mrf.mxu0 }
 0x15a   : > { %v998_v16 = vpop.f32.mrf.mxu1  ;;  %v1409_v17 = vpack.c.bf16 %v944_v13, %v942_v9  ;;  %v946_v19 = vadd.f32 %v945_v15, %v370_v47 }
 0x15b   : > { %v1410_v18 = vpack.c.bf16 %v997_v14, %v995_v10  ;;  %v999_v20 = vadd.f32 %v998_v16, %v378_v48  ;;  %v947_v21 = vpop.f32.mrf.mxu0 }
 0x15c   : > { %v1000_v22 = vpop.f32.mrf.mxu1  ;;  %1134 = vst [vmem:[%s2044_s22 + $0x30] sm:$0xff] %v1409_v17  ;;  %v948_v23 = vadd.f32 %v947_v21, %v374_v49 }
 0x15d   : > { %1135 = vst [vmem:[%s2044_s22 + $0x38] sm:$0xff] %v1410_v18  ;;  %v1001_v24 = vadd.f32 %v1000_v22, %v382_v50 }
 0x15e   : > { %v1412_v25 = vpack.c.bf16 %v948_v23, %v946_v19 }
 0x15f   : > { %v1413_v26 = vpack.c.bf16 %v1001_v24, %v999_v20 }
 0x160   : > { %1137 = vst [vmem:[%s2044_s22 + $0x48] sm:$0xff] %v1412_v25 }
 0x161   : > { %1138 = vst [vmem:[%s2044_s22 + $0x50] sm:$0xff] %v1413_v26 }
 0x18d   : > { %v1037_v27 = vpop.f32.mrf.mxu0 }
 0x18e   : > { %v1047_v28 = vpop.f32.mrf.mxu1  ;;  %v1038_v31 = vadd.f32 %v1037_v27, %v2039_v40 }
 0x18f   : > { %v1039_v29 = vpop.f32.mrf.mxu0  ;;  %v1048_v32 = vadd.f32 %v1047_v28, %v2039_v40 }
 0x190   : > { %v1049_v30 = vpop.f32.mrf.mxu1  ;;  %v1040_v33 = vadd.f32 %v1039_v29, %v2041_v42 }
 0x191   : > { %v1050_v34 = vadd.f32 %v1049_v30, %v2041_v42  ;;  %v1041_v35 = vpop.f32.mrf.mxu0 }
 0x192   : > { %v1051_v36 = vpop.f32.mrf.mxu1  ;;  %v1405_v37 = vpack.c.bf16 %v1040_v33, %v1038_v31  ;;  %v1042_v43 = vadd.f32 %v1041_v35, %v2039_v40 }
 0x193   : > { %v1411_v38 = vpack.c.bf16 %v1050_v34, %v1048_v32  ;;  %v1043_v39 = vpop.f32.mrf.mxu0  ;;  %v1052_v44 = vadd.f32 %v1051_v36, %v2039_v40 }
 0x194   : > { %v1053_v41 = vpop.f32.mrf.mxu1  ;;  %1130 = vst [vmem:[%s2044_s22 + $0x10] sm:$0xff] %v1405_v37  ;;  %v1044_v45 = vadd.f32 %v1043_v39, %v2041_v42 }
 0x195   : > { %1136 = vst [vmem:[%s2044_s22 + $0x40] sm:$0xff] %v1411_v38  ;;  %v1054_v46 = vadd.f32 %v1053_v41, %v2041_v42 }
 0x196   : > { %v1408_v47 = vpack.c.bf16 %v1044_v45, %v1042_v43 }
 0x197   : > { %v1414_v48 = vpack.c.bf16 %v1054_v46, %v1052_v44 }
 0x198   : > { %1133 = vst [vmem:[%s2044_s22 + $0x28] sm:$0xff] %v1408_v47 }
 0x199   : > { %1139 = vst [vmem:[%s2044_s22 + $0x58] sm:$0xff] %v1414_v48 }
 0x19a   : > { %1781 = shalt.err (!%p1778_p5)
}
 0x19b   : > { %s1782_s27 = scalar_lea.hbm %s2069_s21, 1536  ;;  %s1786_s4 = scalar_lea.hbm %s2124_s3, 3072 }
 0x19c   : > { %p1783_p10 = scmp.ne.s32.totalorder %s2069_s21, %s1782_s27  ;;  %p1787_p6 = scmp.lt.s32.totalorder %s2069_s21, %s2124_s3 }
 0x19d   : > { %p1788_p12 = scmp.lt.s32.totalorder %s1786_s4, %s1782_s27 }
 0x19e   : > { %p1784_p1 = pnand %p1783_p10, %p1979_p7 }
 0x19f   : > { %p1789_p3 = por %p1788_p12, %p1787_p6 }
 0x1a0   : > { %p1785_p4 = pneg %p1784_p1 }
 0x1a2   : > { %p1790_p8 = pnand %p1789_p3, %p1785_p4 }
 0x1a4   : > { %1793 = shalt.err (!%p1790_p8)
}
 0x1a5   : > { %s1862_s22 = smov 384   ;;  %s1863_s24 = smov 24  }
 0x1a6   : > { %1459 = dma.vmem_to_hbm [thread:$0]  (%p1979_p7), %s2071_s5, 1536, %s2069_s21, %s1141_s8, %s1862_s22, %s1862_s22, %s1863_s24  }
 0x1a7 PF: > { %s1174_s15 = sand.u32 1, %s1832_s12   ;;  %p2138_p9 = scmp.ne.s32.totalorder %s2131_s23, 0 }
 0x1a8   : > { %p2139_p11 = scmp.ge.s32.totalorder %s1852_s17, 2  ;;  %s1175_s7 = scalar_lea.sflag [#allocation4], %s1174_s15 }
 0x1aa   : > { %p1473_p2 = pnand %p2139_p11, %p2138_p9 }
 0x1ac   : > { %p1474_p13 = pneg %p1473_p2 }
 0x1ae   : > { %1827 = dma.done.wait (%p1474_p13), %s1175_s7, 1536  }
 0x1af   : > { %1829 = vsyncadd (%p1474_p13), %s1175_s7, 4294965760  ;;  %s20_s17 = sadd.s32 1, %s1852_s17   ;;  %s2140_s12 = smov %s1836_s13 }
 0x1b0   : > { %p17_p0 = scmp.ge.s32.totalorder %s20_s17, 4   ;;  %s2141_s13 = smov %s1840_s14 }
 0x1b1   : > { %s2142_s14 = smov %s1988_s29  ;;  %s2143_s15 = smov %s1848_s16 }
 0x1b2   : > { %s2144_s16 = smov %s2146_s11  ;;  %19 = sbr.rel (!%p17_p0) target bundleno = 7 (0x7), region = 87 }
 0x1b7   :  { %1180 = vsyncpa [#allocation3], 1 }
 0x1b8   :  { %1182 = vsyncpa [#allocation3 + $0x1], 1 }
 0x1b9   :  { %1183 = vsyncpa [#allocation6], 1 }
 0x1ba   :  { %1184 = vsyncpa [#allocation4], 1 }
 0x1bb   :  { %1186 = vsyncpa [#allocation4 + $0x1], 1 }

</bundles_post_ra>
